<compile_context>
chip_gen: v7x
topology: tpu7x:2x2x1
jax: 0.10.0
libtpu: 0.0.40
codegen_flags: <defaults>
</compile_context>

<pallas_src>
import functools

import jax
import jax.numpy as jnp
from jax import lax
from jax.experimental import pallas as pl
from jax.experimental.pallas import tpu as pltpu

_NEG_FILL = -1e30          # bias for padded output classes -> exp() underflows to 0
_BN_EPS = 1e-5
_RESIDENT_H_BUDGET = 48 * 1024 * 1024   # conservative vs v7x's 64 MiB physical VMEM


def _round_up(v, m):
    return ((v + m - 1) // m) * m


def _pad2d(a, rows, cols, fill=0.0):
    r, c = a.shape
    if r == rows and c == cols:
        return a
    return jnp.pad(a, ((0, rows - r), (0, cols - c)), constant_values=fill)


def mlp_kernel(x_ref, w1_ref, gamma_ref, beta_ref, w2_ref, b2_ref, o_ref,
               *scratch, n_rows, resident_h):
    if resident_h:
        h_ref, sum_ref, sumsq_ref, scale_ref, shift_ref = scratch
    else:
        sum_ref, sumsq_ref, scale_ref, shift_ref = scratch
        h_ref = None

    # program_id only at the top level (never inside a pl.when branch): the branch
    # closures capture plain scalar values, so no `program_id` primitive ends up
    # inside a cond jaxpr.
    phase = pl.program_id(0)
    t = pl.program_id(1)

    @pl.when(phase == 0)
    def _stats_pass():
        # fc1 (no bias: cancelled exactly by BatchNorm's batch-mean subtraction).
        # x/w1 may be bf16 (MXU-native); accumulate in f32.
        h = jnp.dot(x_ref[...], w1_ref[...], preferred_element_type=jnp.float32)

        @pl.when(t == 0)
        def _init():
            sum_ref[...] = jnp.zeros_like(sum_ref)
            sumsq_ref[...] = jnp.zeros_like(sumsq_ref)

        # Per-feature batch sums as XLU axis=0 reductions; the MXU stays busy with
        # fc1.  Padded batch rows are exactly zero (zero-padded x, no bias) so they
        # contribute nothing to the statistics.
        sum_ref[...] += jnp.sum(h, axis=0, keepdims=True)
        sumsq_ref[...] += jnp.sum(h * h, axis=0, keepdims=True)

        if resident_h:
            # Stash fc1 activations so phase 1 neither re-reads x nor re-runs fc1.
            h_ref[t] = h

    @pl.when(phase == 1)
    def _project_pass():
        @pl.when(t == 0)
        def _fold_bn():
            # Hoisted BN fold: computed once, reused by every batch tile.
            inv_n = 1.0 / n_rows                               # static constant
            mean = sum_ref[...] * inv_n
            var = jnp.maximum(sumsq_ref[...] * inv_n - mean * mean, 0.0)
            scale = gamma_ref[...] * lax.rsqrt(var + _BN_EPS)
            scale_ref[...] = scale
            shift_ref[...] = beta_ref[...] - mean * scale

        if resident_h:
            h = h_ref[t]
        else:
            # Fallback for activation footprints that do not fit VMEM.
            # TODO(synk): stream a bf16 h copy through an HBM scratch instead of
            #             recomputing fc1 when N*Hp exceeds the VMEM budget.
            h = jnp.dot(x_ref[...], w1_ref[...], preferred_element_type=jnp.float32)

        a = jnp.maximum(h * scale_ref[...] + shift_ref[...], 0.0)   # BN + ReLU, f32

        w2 = w2_ref[...]
        logits = jnp.dot(a.astype(w2.dtype), w2,
                         preferred_element_type=jnp.float32) + b2_ref[...]

        # log_softmax along dim=1 (padded classes carry a -1e30 bias -> exp()==0).
        m = jnp.max(logits, axis=1, keepdims=True)
        shifted = logits - m
        lse = jnp.log(jnp.sum(jnp.exp(shifted), axis=1, keepdims=True))
        o_ref[...] = (shifted - lse).astype(o_ref.dtype)


def mlp_forward(x, w1, b1, gamma, beta, w2, b2, *,
                tile_n=512, use_bf16_matmul=True):
    """Fused MLP forward. Weights are (in, out) layout (transpose of nn.Linear.weight).

    `b1` is accepted for interface parity with nn.Linear but is not used: with
    BatchNorm running on batch statistics the fc1 bias is exactly cancelled by the
    per-feature mean subtraction, so dropping it does not change the output.
    """
    del b1
    n, k = x.shape
    h_dim = w1.shape[1]
    o_dim = w2.shape[1]

    # Lane-dense padding: feature dims up to multiples of 128, batch up to a multiple
    # of the (8-aligned) batch tile.
    kp = _round_up(k, 128)
    hp = _round_up(h_dim, 128)
    op = _round_up(o_dim, 128)
    np_ = _round_up(n, 8)
    tile_n = min(tile_n, np_)
    np_ = _round_up(np_, tile_n)
    n_tiles = np_ // tile_n

    mxu_dtype = jnp.bfloat16 if use_bf16_matmul else jnp.float32
    f32 = jnp.float32
    mxu_bytes = jnp.dtype(mxu_dtype).itemsize

    # Cast BEFORE padding (halves wrapper-side HBM traffic for bf16); _pad2d skips the
    # pad entirely when the array is already lane/sublane aligned.
    xp = _pad2d(x.astype(mxu_dtype), np_, kp)
    w1p = _pad2d(w1.astype(mxu_dtype), kp, hp)
    w2p = _pad2d(w2.astype(mxu_dtype), hp, op)
    gp = _pad2d(gamma.reshape(1, -1).astype(f32), 1, hp)
    bp = _pad2d(beta.reshape(1, -1).astype(f32), 1, hp)
    b2p = _pad2d(b2.reshape(1, -1).astype(f32), 1, op, fill=_NEG_FILL)

    # Keep fc1 activations resident in VMEM between phases when they fit a budget that
    # is conservative for v7x (64 MiB physical VMEM); otherwise recompute in phase 1.
    resident_bytes = np_ * hp * 4                                    # f32 h scratch
    weight_bytes = 2 * (kp * hp + hp * op) * mxu_bytes               # double-buffered residents
    stream_bytes = 2 * (tile_n * kp * mxu_bytes + tile_n * op * 4)   # x tile + out tile
    vec_bytes = 8 * hp * 4 + 2 * op * 4
    resident_h = (resident_bytes + weight_bytes + stream_bytes + vec_bytes
                  <= _RESIDENT_H_BUDGET)

    kernel = functools.partial(mlp_kernel, n_rows=float(n), resident_h=resident_h)

    # In resident-h mode phase 1 does not need x: collapse its block index to 0 so the
    # pipeline stops streaming it after phase 0.
    if resident_h:
        x_index = lambda p, t: (t * (1 - p), 0)
    else:
        x_index = lambda p, t: (t, 0)

    scratch_shapes = []
    if resident_h:
        scratch_shapes.append(pltpu.VMEM((n_tiles, tile_n, hp), jnp.float32))
    scratch_shapes += [pltpu.VMEM((1, hp), jnp.float32),    # per-feature sum
                       pltpu.VMEM((1, hp), jnp.float32),    # per-feature sum of squares
                       pltpu.VMEM((1, hp), jnp.float32),    # folded BN scale
                       pltpu.VMEM((1, hp), jnp.float32)]    # folded BN shift

    # TODO(synk): mark w1/w2/gamma/beta/b2 (grid-invariant operands) with
    #             pipeline_mode=pl.Buffered(1) once single-buffered BlockSpecs are
    #             supported by the deployed runtime; frees a full extra weight copy.
    out_padded = pl.pallas_call(
        kernel,
        out_shape=jax.ShapeDtypeStruct((np_, op), jnp.float32),
        grid_spec=pltpu.PrefetchScalarGridSpec(
            num_scalar_prefetch=0,
            # Phase axis (0: BN stats + h stash, 1: BN/ReLU/fc2/log_softmax) outermost;
            # batch-tile axis innermost and pipelined by BlockSpec.
            grid=(2, n_tiles),
            in_specs=[
                pl.BlockSpec((tile_n, kp), x_index),             # x tile (streamed)
                pl.BlockSpec((kp, hp), lambda p, t: (0, 0)),     # w1 (resident)
                pl.BlockSpec((1, hp), lambda p, t: (0, 0)),      # gamma
                pl.BlockSpec((1, hp), lambda p, t: (0, 0)),      # beta
                pl.BlockSpec((hp, op), lambda p, t: (0, 0)),     # w2 (resident)
                pl.BlockSpec((1, op), lambda p, t: (0, 0)),      # b2
            ],
            # Phase 0 never writes the output: pin it to block 0 during phase 0 so no
            # stale VMEM block is ever written back to HBM.
            out_specs=pl.BlockSpec((tile_n, op), lambda p, t: (t * p, 0)),
            scratch_shapes=scratch_shapes,
        ),
        compiler_params=pltpu.CompilerParams(
            # Phase axis is a true dependency; batch-tile axis shares BN/h scratch.
            # TODO(synk): on v7x split the batch-tile axis across both TensorCores and
            #             combine the per-core BN partial sums through CMEM.
            # TODO(synk): for very wide input_size add an innermost K grid axis with a
            #             (tile_n, hp) f32 accumulator instead of a resident (kp, hp) w1.
            dimension_semantics=("arbitrary", "arbitrary"),
            vmem_limit_bytes=64 * 1024 * 1024,
        ),
    )(xp, w1p, gp, bp, w2p, b2p)

    return out_padded[:n, :o_dim]


def reference_forward(x, w1, b1, gamma, beta, w2, b2, *, use_bf16_matmul=False):
    """Pure-JAX reference mirroring the PyTorch module (fc1 bias included)."""
    def mm(a, b):
        if use_bf16_matmul:
            a = a.astype(jnp.bfloat16)
            b = b.astype(jnp.bfloat16)
        return jnp.dot(a, b, preferred_element_type=jnp.float32)

    h = mm(x, w1) + b1
    mean = jnp.mean(h, axis=0, keepdims=True)
    var = jnp.mean((h - mean) ** 2, axis=0, keepdims=True)
    h = (h - mean) / jnp.sqrt(var + _BN_EPS)
    h = h * gamma + beta
    h = jnp.maximum(h, 0.0)
    logits = mm(h, w2) + b2
    return jax.nn.log_softmax(logits, axis=1)


if __name__ == "__main__":
    # Small, forward-consistent shapes: x is (batch, input_size).
    batch, input_size, hidden_size, output_size = 8, 16, 32, 10

    key = jax.random.PRNGKey(0)
    kx, kw1, kb1, kw2, kb2 = jax.random.split(key, 5)

    x = jax.random.normal(kx, (batch, input_size), dtype=jnp.float32)

    bound1 = 1.0 / (input_size ** 0.5)
    w1 = jax.random.uniform(kw1, (input_size, hidden_size), jnp.float32, -bound1, bound1)
    b1 = jax.random.uniform(kb1, (1, hidden_size), jnp.float32, -bound1, bound1)

    bound2 = 1.0 / (hidden_size ** 0.5)
    w2 = jax.random.uniform(kw2, (hidden_size, output_size), jnp.float32, -bound2, bound2)
    b2 = jax.random.uniform(kb2, (1, output_size), jnp.float32, -bound2, bound2)

    # BatchNorm affine params (PyTorch default init: gamma=1, beta=0).
    gamma = jnp.ones((1, hidden_size), jnp.float32)
    beta = jnp.zeros((1, hidden_size), jnp.float32)

    # 1) Full-precision path: must match the PyTorch-semantics reference tightly.
    out_f32 = jax.block_until_ready(
        mlp_forward(x, w1, b1, gamma, beta, w2, b2, use_bf16_matmul=False))
    ref_f32 = reference_forward(x, w1, b1, gamma, beta, w2, b2)
    assert out_f32.shape == (batch, output_size)
    assert jnp.allclose(out_f32, ref_f32, atol=1e-4, rtol=1e-4), "f32 mismatch vs reference"

    # 2) bf16-MXU-operand path: must match a reference using the same bf16 operands
    #    tightly, and the f32 reference to bf16 precision.
    out_bf16 = jax.block_until_ready(
        mlp_forward(x, w1, b1, gamma, beta, w2, b2, use_bf16_matmul=True))
    ref_bf16 = reference_forward(x, w1, b1, gamma, beta, w2, b2, use_bf16_matmul=True)
    assert jnp.allclose(out_bf16, ref_bf16, atol=5e-3, rtol=5e-3), "bf16 mismatch vs matched reference"
    assert jnp.allclose(out_bf16, ref_f32, atol=5e-2, rtol=5e-2), "bf16 drift vs f32 reference"

    print("KERNEL_OK")
</pallas_src>

<mosaic_0001>
module attributes {stable_mosaic.version = 11 : i64} {
  func.func @mlp_kernel(%arg0: i32, %arg1: i32, %arg2: memref<8x128xf32, #tpu.memory_space<vmem>>, %arg3: memref<128x128xf32, #tpu.memory_space<vmem>>, %arg4: memref<1x128xf32, #tpu.memory_space<vmem>>, %arg5: memref<1x128xf32, #tpu.memory_space<vmem>>, %arg6: memref<128x128xf32, #tpu.memory_space<vmem>>, %arg7: memref<1x128xf32, #tpu.memory_space<vmem>>, %arg8: memref<8x128xf32, #tpu.memory_space<vmem>>, %arg9: memref<1x8x128xf32, #tpu.memory_space<vmem>>, %arg10: memref<1x128xf32, #tpu.memory_space<vmem>>, %arg11: memref<1x128xf32, #tpu.memory_space<vmem>>, %arg12: memref<1x128xf32, #tpu.memory_space<vmem>>, %arg13: memref<1x128xf32, #tpu.memory_space<vmem>>) attributes {dimension_semantics = [#tpu.dimension_semantics<arbitrary>, #tpu.dimension_semantics<arbitrary>], iteration_bounds = array<i64: 2, 1>, scalar_prefetch = 0 : i64, scratch_operands = 5 : i64, tpu.core_type = #tpu.core_type<tc>, window_params = [{transform_indices = @transform_0, window_bounds = array<i64: 8, 128>}, {pipeline_mode = #tpu.pipeline_mode<synchronous>, transform_indices = @transform_1, window_bounds = array<i64: 128, 128>}, {pipeline_mode = #tpu.pipeline_mode<synchronous>, transform_indices = @transform_2, window_bounds = array<i64: 1, 128>}, {pipeline_mode = #tpu.pipeline_mode<synchronous>, transform_indices = @transform_3, window_bounds = array<i64: 1, 128>}, {pipeline_mode = #tpu.pipeline_mode<synchronous>, transform_indices = @transform_4, window_bounds = array<i64: 128, 128>}, {pipeline_mode = #tpu.pipeline_mode<synchronous>, transform_indices = @transform_5, window_bounds = array<i64: 1, 128>}, {transform_indices = @transform_6, window_bounds = array<i64: 8, 128>}]} {
    %c0_i32 = arith.constant 0 : i32
    %0 = arith.cmpi eq, %arg0, %c0_i32 : i32
    %1 = arith.extui %0 : i1 to i32
    %c0_i32_0 = arith.constant 0 : i32
    %2 = arith.cmpi ne, %1, %c0_i32_0 : i32
    scf.if %2 {
      %c0 = arith.constant 0 : index
      %c0_2 = arith.constant 0 : index
      %6 = vector.load %arg2[%c0, %c0_2] : memref<8x128xf32, #tpu.memory_space<vmem>>, vector<8x128xf32>
      %c0_3 = arith.constant 0 : index
      %c0_4 = arith.constant 0 : index
      %7 = vector.load %arg3[%c0_3, %c0_4] : memref<128x128xf32, #tpu.memory_space<vmem>>, vector<128x128xf32>
      %cst = arith.constant dense<0.000000e+00> : vector<8x128xf32>
      %8 = tpu.matmul %6, %7, %cst {dimension_numbers = #tpu.dot_dimension_numbers<[1], [0], [0], [1], [0, 0, 1, 1], [], []>} : vector<8x128xf32>, vector<128x128xf32>, vector<8x128xf32> -> vector<8x128xf32>
      %c0_i32_5 = arith.constant 0 : i32
      %9 = arith.cmpi eq, %arg1, %c0_i32_5 : i32
      %10 = arith.extui %9 : i1 to i32
      %c0_i32_6 = arith.constant 0 : i32
      %11 = arith.cmpi ne, %10, %c0_i32_6 : i32
      scf.if %11 {
        %cst_19 = arith.constant 0.000000e+00 : f32
        %27 = vector.broadcast %cst_19 : f32 to vector<1x128xf32>
        %c0_20 = arith.constant 0 : index
        %c0_21 = arith.constant 0 : index
        %28 = vector.load %arg10[%c0_20, %c0_21] : memref<1x128xf32, #tpu.memory_space<vmem>>, vector<1x128xf32>
        tpu.vector_store %arg10[%c0_20, %c0_21], %27 {strides = array<i32>} : memref<1x128xf32, #tpu.memory_space<vmem>>, vector<1x128xf32>,
        %cst_22 = arith.constant 0.000000e+00 : f32
        %29 = vector.broadcast %cst_22 : f32 to vector<1x128xf32>
        %c0_23 = arith.constant 0 : index
        %c0_24 = arith.constant 0 : index
        %30 = vector.load %arg11[%c0_23, %c0_24] : memref<1x128xf32, #tpu.memory_space<vmem>>, vector<1x128xf32>
        tpu.vector_store %arg11[%c0_23, %c0_24], %29 {strides = array<i32>} : memref<1x128xf32, #tpu.memory_space<vmem>>, vector<1x128xf32>,
      } else {
      }
      %c0_7 = arith.constant 0 : index
      %c0_8 = arith.constant 0 : index
      %12 = vector.load %arg10[%c0_7, %c0_8] : memref<1x128xf32, #tpu.memory_space<vmem>>, vector<1x128xf32>
      %cst_9 = arith.constant dense<0.000000e+00> : vector<128xf32>
      %13 = vector.multi_reduction <add>, %8, %cst_9 [0] : vector<8x128xf32> to vector<128xf32>
      %14 = vector.shape_cast %13 : vector<128xf32> to vector<1x128xf32>
      %15 = arith.addf %12, %14 : vector<1x128xf32>
      %c0_10 = arith.constant 0 : index
      %c0_11 = arith.constant 0 : index
      %16 = vector.load %arg10[%c0_10, %c0_11] : memref<1x128xf32, #tpu.memory_space<vmem>>, vector<1x128xf32>
      tpu.vector_store %arg10[%c0_10, %c0_11], %15 {strides = array<i32>} : memref<1x128xf32, #tpu.memory_space<vmem>>, vector<1x128xf32>,
      %c0_12 = arith.constant 0 : index
      %c0_13 = arith.constant 0 : index
      %17 = vector.load %arg11[%c0_12, %c0_13] : memref<1x128xf32, #tpu.memory_space<vmem>>, vector<1x128xf32>
      %18 = arith.mulf %8, %8 : vector<8x128xf32>
      %cst_14 = arith.constant dense<0.000000e+00> : vector<128xf32>
      %19 = vector.multi_reduction <add>, %18, %cst_14 [0] : vector<8x128xf32> to vector<128xf32>
      %20 = vector.shape_cast %19 : vector<128xf32> to vector<1x128xf32>
      %21 = arith.addf %17, %20 : vector<1x128xf32>
      %c0_15 = arith.constant 0 : index
      %c0_16 = arith.constant 0 : index
      %22 = vector.load %arg11[%c0_15, %c0_16] : memref<1x128xf32, #tpu.memory_space<vmem>>, vector<1x128xf32>
      tpu.vector_store %arg11[%c0_15, %c0_16], %21 {strides = array<i32>} : memref<1x128xf32, #tpu.memory_space<vmem>>, vector<1x128xf32>,
      %23 = arith.index_cast %arg1 : i32 to index
      %c0_17 = arith.constant 0 : index
      %c0_18 = arith.constant 0 : index
      %24 = vector.load %arg9[%23, %c0_17, %c0_18] : memref<1x8x128xf32, #tpu.memory_space<vmem>>, vector<1x8x128xf32>
      %25 = vector.shape_cast %24 : vector<1x8x128xf32> to vector<8x128xf32>
      %26 = vector.shape_cast %8 : vector<8x128xf32> to vector<1x8x128xf32>
      tpu.vector_store %arg9[%23, %c0_17, %c0_18], %26 {strides = array<i32>} : memref<1x8x128xf32, #tpu.memory_space<vmem>>, vector<1x8x128xf32>,
    } else {
    }
    %c1_i32 = arith.constant 1 : i32
    %3 = arith.cmpi eq, %arg0, %c1_i32 : i32
    %4 = arith.extui %3 : i1 to i32
    %c0_i32_1 = arith.constant 0 : i32
    %5 = arith.cmpi ne, %4, %c0_i32_1 : i32
    scf.if %5 {
      %c0_i32_2 = arith.constant 0 : i32
      %6 = arith.cmpi eq, %arg1, %c0_i32_2 : i32
      %7 = arith.extui %6 : i1 to i32
      %c0_i32_3 = arith.constant 0 : i32
      %8 = arith.cmpi ne, %7, %c0_i32_3 : i32
      scf.if %8 {
        %c0_18 = arith.constant 0 : index
        %c0_19 = arith.constant 0 : index
        %36 = vector.load %arg10[%c0_18, %c0_19] : memref<1x128xf32, #tpu.memory_space<vmem>>, vector<1x128xf32>
        %cst_20 = arith.constant 1.250000e-01 : f32
        %37 = vector.broadcast %cst_20 : f32 to vector<1x128xf32>
        %38 = arith.mulf %36, %37 : vector<1x128xf32>
        %c0_21 = arith.constant 0 : index
        %c0_22 = arith.constant 0 : index
        %39 = vector.load %arg11[%c0_21, %c0_22] : memref<1x128xf32, #tpu.memory_space<vmem>>, vector<1x128xf32>
        %cst_23 = arith.constant 1.250000e-01 : f32
        %40 = vector.broadcast %cst_23 : f32 to vector<1x128xf32>
        %41 = arith.mulf %39, %40 : vector<1x128xf32>
        %42 = arith.mulf %38, %38 : vector<1x128xf32>
        %43 = arith.subf %41, %42 : vector<1x128xf32>
        %cst_24 = arith.constant 0.000000e+00 : f32
        %44 = vector.broadcast %cst_24 : f32 to vector<1x128xf32>
        %45 = arith.maximumf %43, %44 : vector<1x128xf32>
        %c0_25 = arith.constant 0 : index
        %c0_26 = arith.constant 0 : index
        %46 = vector.load %arg4[%c0_25, %c0_26] : memref<1x128xf32, #tpu.memory_space<vmem>>, vector<1x128xf32>
        %cst_27 = arith.constant 9.99999974E-6 : f32
        %47 = vector.broadcast %cst_27 : f32 to vector<1x128xf32>
        %48 = arith.addf %45, %47 : vector<1x128xf32>
        %49 = math.rsqrt %48 : vector<1x128xf32>
        %50 = arith.mulf %46, %49 : vector<1x128xf32>
        %c0_28 = arith.constant 0 : index
        %c0_29 = arith.constant 0 : index
        %51 = vector.load %arg12[%c0_28, %c0_29] : memref<1x128xf32, #tpu.memory_space<vmem>>, vector<1x128xf32>
        tpu.vector_store %arg12[%c0_28, %c0_29], %50 {strides = array<i32>} : memref<1x128xf32, #tpu.memory_space<vmem>>, vector<1x128xf32>,
        %c0_30 = arith.constant 0 : index
        %c0_31 = arith.constant 0 : index
        %52 = vector.load %arg5[%c0_30, %c0_31] : memref<1x128xf32, #tpu.memory_space<vmem>>, vector<1x128xf32>
        %53 = arith.mulf %38, %50 : vector<1x128xf32>
        %54 = arith.subf %52, %53 : vector<1x128xf32>
        %c0_32 = arith.constant 0 : index
        %c0_33 = arith.constant 0 : index
        %55 = vector.load %arg13[%c0_32, %c0_33] : memref<1x128xf32, #tpu.memory_space<vmem>>, vector<1x128xf32>
        tpu.vector_store %arg13[%c0_32, %c0_33], %54 {strides = array<i32>} : memref<1x128xf32, #tpu.memory_space<vmem>>, vector<1x128xf32>,
      } else {
      }
      %9 = arith.index_cast %arg1 : i32 to index
      %c0 = arith.constant 0 : index
      %c0_4 = arith.constant 0 : index
      %10 = vector.load %arg9[%9, %c0, %c0_4] : memref<1x8x128xf32, #tpu.memory_space<vmem>>, vector<1x8x128xf32>
      %11 = vector.shape_cast %10 : vector<1x8x128xf32> to vector<8x128xf32>
      %c0_5 = arith.constant 0 : index
      %c0_6 = arith.constant 0 : index
      %12 = vector.load %arg12[%c0_5, %c0_6] : memref<1x128xf32, #tpu.memory_space<vmem>>, vector<1x128xf32>
      %13 = vector.broadcast %12 : vector<1x128xf32> to vector<8x128xf32>
      %14 = arith.mulf %11, %13 : vector<8x128xf32>
      %c0_7 = arith.constant 0 : index
      %c0_8 = arith.constant 0 : index
      %15 = vector.load %arg13[%c0_7, %c0_8] : memref<1x128xf32, #tpu.memory_space<vmem>>, vector<1x128xf32>
      %16 = vector.broadcast %15 : vector<1x128xf32> to vector<8x128xf32>
      %17 = arith.addf %14, %16 : vector<8x128xf32>
      %cst = arith.constant 0.000000e+00 : f32
      %18 = vector.broadcast %cst : f32 to vector<8x128xf32>
      %19 = arith.maximumf %17, %18 : vector<8x128xf32>
      %c0_9 = arith.constant 0 : index
      %c0_10 = arith.constant 0 : index
      %20 = vector.load %arg6[%c0_9, %c0_10] : memref<128x128xf32, #tpu.memory_space<vmem>>, vector<128x128xf32>
      %cst_11 = arith.constant dense<0.000000e+00> : vector<8x128xf32>
      %21 = tpu.matmul %19, %20, %cst_11 {dimension_numbers = #tpu.dot_dimension_numbers<[1], [0], [0], [1], [0, 0, 1, 1], [], []>} : vector<8x128xf32>, vector<128x128xf32>, vector<8x128xf32> -> vector<8x128xf32>
      %c0_12 = arith.constant 0 : index
      %c0_13 = arith.constant 0 : index
      %22 = vector.load %arg7[%c0_12, %c0_13] : memref<1x128xf32, #tpu.memory_space<vmem>>, vector<1x128xf32>
      %23 = vector.broadcast %22 : vector<1x128xf32> to vector<8x128xf32>
      %24 = arith.addf %21, %23 : vector<8x128xf32>
      %cst_14 = arith.constant dense<0xFF800000> : vector<8xf32>
      %25 = vector.multi_reduction <maximumf>, %24, %cst_14 [1] : vector<8x128xf32> to vector<8xf32>
      %26 = vector.shape_cast %25 : vector<8xf32> to vector<8x1xf32>
      %27 = vector.broadcast %26 : vector<8x1xf32> to vector<8x128xf32>
      %28 = arith.subf %24, %27 : vector<8x128xf32>
      %29 = math.exp %28 : vector<8x128xf32>
      %cst_15 = arith.constant dense<0.000000e+00> : vector<8xf32>
      %30 = vector.multi_reduction <add>, %29, %cst_15 [1] : vector<8x128xf32> to vector<8xf32>
      %31 = vector.shape_cast %30 : vector<8xf32> to vector<8x1xf32>
      %32 = math.log %31 : vector<8x1xf32>
      %33 = vector.broadcast %32 : vector<8x1xf32> to vector<8x128xf32>
      %34 = arith.subf %28, %33 : vector<8x128xf32>
      %c0_16 = arith.constant 0 : index
      %c0_17 = arith.constant 0 : index
      %35 = vector.load %arg8[%c0_16, %c0_17] : memref<8x128xf32, #tpu.memory_space<vmem>>, vector<8x128xf32>
      tpu.vector_store %arg8[%c0_16, %c0_17], %34 {strides = array<i32>} : memref<8x128xf32, #tpu.memory_space<vmem>>, vector<8x128xf32>,
    } else {
    }
    return
  }
  func.func @transform_0(%arg0: i32, %arg1: i32) -> (i32, i32) {
    %c1_i32 = arith.constant 1 : i32
    %0 = arith.subi %c1_i32, %arg0 : i32
    %1 = arith.muli %arg1, %0 : i32
    %c0_i32 = arith.constant 0 : i32
    %c0_i32_0 = arith.constant 0 : i32
    return %1, %c0_i32 : i32, i32
  }
  func.func @transform_1(%arg0: i32, %arg1: i32) -> (i32, i32) {
    %c0_i32 = arith.constant 0 : i32
    %c0_i32_0 = arith.constant 0 : i32
    %c0_i32_1 = arith.constant 0 : i32
    return %c0_i32, %c0_i32_0 : i32, i32
  }
  func.func @transform_2(%arg0: i32, %arg1: i32) -> (i32, i32) {
    %c0_i32 = arith.constant 0 : i32
    %c0_i32_0 = arith.constant 0 : i32
    %c0_i32_1 = arith.constant 0 : i32
    return %c0_i32, %c0_i32_0 : i32, i32
  }
  func.func @transform_3(%arg0: i32, %arg1: i32) -> (i32, i32) {
    %c0_i32 = arith.constant 0 : i32
    %c0_i32_0 = arith.constant 0 : i32
    %c0_i32_1 = arith.constant 0 : i32
    return %c0_i32, %c0_i32_0 : i32, i32
  }
  func.func @transform_4(%arg0: i32, %arg1: i32) -> (i32, i32) {
    %c0_i32 = arith.constant 0 : i32
    %c0_i32_0 = arith.constant 0 : i32
    %c0_i32_1 = arith.constant 0 : i32
    return %c0_i32, %c0_i32_0 : i32, i32
  }
  func.func @transform_5(%arg0: i32, %arg1: i32) -> (i32, i32) {
    %c0_i32 = arith.constant 0 : i32
    %c0_i32_0 = arith.constant 0 : i32
    %c0_i32_1 = arith.constant 0 : i32
    return %c0_i32, %c0_i32_0 : i32, i32
  }
  func.func @transform_6(%arg0: i32, %arg1: i32) -> (i32, i32) {
    %0 = arith.muli %arg1, %arg0 : i32
    %c0_i32 = arith.constant 0 : i32
    %c0_i32_0 = arith.constant 0 : i32
    return %0, %c0_i32 : i32, i32
  }
}

</mosaic_0001>

<bundles_post_ra>
// kernel: tpu_custom_call.1
= control target key start
LH: loop header
LB: loop body
LE: loop exit
PB: predicated region body
PF: predicated region fallthrough
CT: control target
= control target key end

     0   :  { %11 = vsyncpa [#allocation8], 0  ;;  %s1572_s0 = inlined_call_operand.hbm [shape: f32[8,128], index: 0, kind: input, shape index: {}]   ;;  %s1573_s1 = inlined_call_operand.hbm [shape: f32[128,128], index: 1, kind: input, shape index: {}]   ;;  %s1574_s2 = inlined_call_operand.hbm [shape: f32[1,128], index: 2, kind: input, shape index: {}]   ;;  %s1575_s3 = inlined_call_operand.hbm [shape: f32[1,128], index: 3, kind: input, shape index: {}]   ;;  %s1576_s4 = inlined_call_operand.hbm [shape: f32[128,128], index: 4, kind: input, shape index: {}]   ;;  %s1577_s5 = inlined_call_operand.hbm [shape: f32[1,128], index: 5, kind: input, shape index: {}]   ;;  %s1578_s6 = inlined_call_operand.hbm [shape: f32[8,128], index: 6, kind: output, shape index: {}]  }
   0x1   :  { %13 = vsyncpa [#allocation8 + $0x1], 0 }
   0x2   :  { %14 = vsyncpa [#allocation11], 0 }
   0x3   :  { %15 = vsyncpa [#allocation14], 0 }
   0x4   :  { %16 = vsyncpa [#allocation17], 0 }
   0x5   :  { %17 = vsyncpa [#allocation9], 0 }
   0x6   :  { %19 = vsyncpa [#allocation9 + $0x1], 0  ;;  %s1348_s21 = smov 0   ;;  %s1350_s22 = smov 0  }
   0x7   :  { %s1352_s23 = smov 0  }
   0x8 LB: > { %s769_s24 = sadd.s32 4294967295, %s1296_s23   ;;  %s37_s26 = sadd.s32 1, %s1292_s22  ;;  %s1296_s23 = sphi %s1352_s23, %s25_s23   ;;  %s1292_s22 = sphi %s1350_s22, %s1594_s22   ;;  %s1288_s21 = sphi %s1348_s21, %s1593_s21  }
   0x9   : > { %p771_p0 = scmp.ge.s32.totalorder %s1296_s23, 1  ;;  %p39_p1 = scmp.ge.s32.totalorder %s37_s26, 2 }
   0xa   : > { %p205_p2 = scmp.lt.s32.totalorder %s1296_s23, 3  ;;  %p1370_p3 = scmp.eq.s32.totalorder %s769_s24, 0 }
   0xb   : > { %s1596_s26 = smov (%p39_p1, %s37_s26), 0  ;;  %s1298_s29 = smov [#allocation10]  }
   0xc   : > { %s1582_s27 = scalar_select %p1370_p3, 1, 0 }
   0xd   : > { %p1376_p4 = pnand %p771_p0, %p205_p2  ;;  %s217_s30 = sshll.u32 %s1298_s29, 4  ;;  %s218_s30 = int_to_ptr.vmem [resolvable:$true] %s217_s30 }
   0xe   : > { %s1299_s8 = smov [#allocation13]   ;;  %s1060_s12 = scalar_lea.hbm %s1573_s1, 2048 }
   0xf   : > { %s1583_s28 = scalar_select %p1376_p4, 1, 0 }
  0x10   : > { %p975_p5 = pneg %p1376_p4  ;;  %s242_s9 = sshll.u32 %s1299_s8, 4  ;;  %s243_s9 = int_to_ptr.vmem [resolvable:$true] %s242_s9 }
  0x11   : > { %p1061_p8 = scmp.ne.s32.totalorder %s1573_s1, %s1060_s12  ;;  %p1067_p12 = scmp.lt.u32.totalorder %s1060_s12, %s1573_s1 }
  0x12   : > { %p1385_p7 = pnand %p1370_p3, %p975_p5 }
  0x14   : > { %p1397_p9 = pneg %p1385_p7 }
  0x16   : > { %p1063_p10 = pnand %p1397_p9, %p1061_p8 }
  0x18   : > { %p1064_p11 = pneg %p1063_p10 }
  0x1a   : > { %p1069_p13 = pnand %p1067_p12, %p1064_p11 }
  0x1c   : > { %1072 = shalt.err (!%p1069_p13)
}
  0x1d   : > { %s1073_s18 = scalar_lea.vmem %s218_s30, 2048  ;;  %p1081_p5 = scmp.lt.s32.totalorder %s218_s30, %s218_s30 }
  0x1e   : > { %p1074_p0 = scmp.ne.s32.totalorder %s218_s30, %s1073_s18  ;;  %p1082_p6 = scmp.lt.s32.totalorder %s1073_s18, %s1073_s18 }
  0x20   : > { %p1076_p1 = pnand %p1074_p0, %p1397_p9  ;;  %p1083_p3 = por %p1082_p6, %p1081_p5 }
  0x22   : > { %p1077_p2 = pneg %p1076_p1 }
  0x24   : > { %p1084_p4 = pnand %p1083_p3, %p1077_p2 }
  0x26   : > { %1087 = shalt.err (!%p1084_p4)
}
  0x27   : > { %s1300_s19 = smov 128   ;;  %s1301_s20 = smov 8  }
  0x28   : > { %978 = dma.hbm_to_vmem [thread:$0]  (!%p1385_p7), %s1573_s1, 2048, %s218_s30, [#allocation11], %s1300_s19, %s1300_s19, %s1301_s20  }
  0x29   : > { %s1302_s10 = smov [#allocation12]   ;;  %s1088_s14 = scalar_lea.hbm %s1575_s3, 16 }
  0x2a   : > { %s231_s11 = sshll.u32 %s1302_s10, 4  ;;  %p1089_p3 = scmp.ne.s32.totalorder %s1575_s3, %s1088_s14  ;;  %s232_s11 = int_to_ptr.vmem [resolvable:$true] %s231_s11 }
  0x2b   : > { %p1095_p8 = scmp.lt.u32.totalorder %s1088_s14, %s1575_s3 }
  0x2c   : > { %p1091_p4 = pnand %p1089_p3, %p1397_p9 }
  0x2e   : > { %p1092_p6 = pneg %p1091_p4 }
  0x30   : > { %p1097_p10 = pnand %p1095_p8, %p1092_p6 }
  0x32   : > { %1100 = shalt.err (!%p1097_p10)
}
  0x33   : > { %s1101_s30 = scalar_lea.vmem %s243_s9, 16  ;;  %s1108_s29 = scalar_lea.vmem %s243_s9, 32 }
  0x34   : > { %p1102_p11 = scmp.ne.s32.totalorder %s243_s9, %s1101_s30  ;;  %p1109_p0 = scmp.lt.s32.totalorder %s243_s9, %s243_s9 }
  0x35   : > { %p1110_p1 = scmp.lt.s32.totalorder %s1108_s29, %s1101_s30 }
  0x36   : > { %p1104_p12 = pnand %p1102_p11, %p1397_p9 }
  0x37   : > { %p1111_p2 = por %p1110_p1, %p1109_p0 }
  0x38   : > { %p1105_p13 = pneg %p1104_p12 }
  0x3a   : > { %p1112_p5 = pnand %p1111_p2, %p1105_p13 }
  0x3c   : > { %1115 = shalt.err (!%p1112_p5)
}
  0x3d   : > { %984 = dma.hbm_to_vmem [thread:$0]  (!%p1385_p7), %s1575_s3, 16, %s243_s9, [#allocation14]  }
  0x3e   : > { %s1116_s13 = scalar_lea.hbm %s1574_s2, 16 }
  0x3f   : > { %p1117_p3 = scmp.ne.s32.totalorder %s1574_s2, %s1116_s13  ;;  %p1123_p8 = scmp.lt.u32.totalorder %s1116_s13, %s1574_s2 }
  0x41   : > { %p1119_p4 = pnand %p1117_p3, %p1397_p9 }
  0x43   : > { %p1120_p6 = pneg %p1119_p4 }
  0x45   : > { %p1125_p10 = pnand %p1123_p8, %p1120_p6 }
  0x47   : > { %1128 = shalt.err (!%p1125_p10)
}
  0x48   : > { %s1129_s30 = scalar_lea.vmem %s232_s11, 16  ;;  %s1136_s9 = scalar_lea.vmem %s232_s11, 32 }
  0x49   : > { %p1130_p11 = scmp.ne.s32.totalorder %s232_s11, %s1129_s30  ;;  %p1137_p0 = scmp.lt.s32.totalorder %s232_s11, %s232_s11 }
  0x4a   : > { %p1138_p1 = scmp.lt.s32.totalorder %s1136_s9, %s1129_s30 }
  0x4b   : > { %p1132_p12 = pnand %p1130_p11, %p1397_p9 }
  0x4c   : > { %p1139_p2 = por %p1138_p1, %p1137_p0 }
  0x4d   : > { %p1133_p13 = pneg %p1132_p12 }
  0x4f   : > { %p1140_p5 = pnand %p1139_p2, %p1133_p13 }
  0x51   : > { %1143 = shalt.err (!%p1140_p5)
}
  0x52   : > { %981 = dma.hbm_to_vmem [thread:$0]  (!%p1385_p7), %s1574_s2, 16, %s232_s11, [#allocation11]  }
  0x53   : > { %s1303_s10 = smov [#allocation15]   ;;  %s1304_s12 = smov [#allocation16]  }
  0x54   : > { %s252_s25 = sshll.u32 %s1303_s10, 4  ;;  %s266_s13 = sshll.u32 %s1304_s12, 4  ;;  %s253_s25 = int_to_ptr.vmem [resolvable:$true] %s252_s25  ;;  %s267_s13 = int_to_ptr.vmem [resolvable:$true] %s266_s13 }
  0x55   : > { %s1144_s17 = scalar_lea.hbm %s1576_s4, 2048 }
  0x56   : > { %p1145_p3 = scmp.ne.s32.totalorder %s1576_s4, %s1144_s17  ;;  %p1151_p8 = scmp.lt.u32.totalorder %s1144_s17, %s1576_s4 }
  0x58   : > { %p1147_p4 = pnand %p1145_p3, %p1397_p9 }
  0x5a   : > { %p1148_p6 = pneg %p1147_p4 }
  0x5c   : > { %p1153_p10 = pnand %p1151_p8, %p1148_p6 }
  0x5e   : > { %1156 = shalt.err (!%p1153_p10)
}
  0x5f   : > { %s1157_s11 = scalar_lea.vmem %s253_s25, 2048  ;;  %p1165_p0 = scmp.lt.s32.totalorder %s253_s25, %s253_s25 }
  0x60   : > { %p1158_p11 = scmp.ne.s32.totalorder %s253_s25, %s1157_s11  ;;  %p1166_p1 = scmp.lt.s32.totalorder %s1157_s11, %s1157_s11 }
  0x62   : > { %p1160_p12 = pnand %p1158_p11, %p1397_p9  ;;  %p1167_p2 = por %p1166_p1, %p1165_p0 }
  0x64   : > { %p1161_p13 = pneg %p1160_p12 }
  0x66   : > { %p1168_p5 = pnand %p1167_p2, %p1161_p13 }
  0x68   : > { %1171 = shalt.err (!%p1168_p5)
}
  0x69   : > { %987 = dma.hbm_to_vmem [thread:$0]  (!%p1385_p7), %s1576_s4, 2048, %s253_s25, [#allocation14], %s1300_s19, %s1300_s19, %s1301_s20  }
  0x6a   : > { %s1172_s16 = scalar_lea.hbm %s1577_s5, 16 }
  0x6b   : > { %p1173_p4 = scmp.ne.s32.totalorder %s1577_s5, %s1172_s16  ;;  %p1179_p10 = scmp.lt.u32.totalorder %s1172_s16, %s1577_s5 }
  0x6d   : > { %p1175_p6 = pnand %p1173_p4, %p1397_p9 }
  0x6f   : > { %p1176_p8 = pneg %p1175_p6 }
  0x71   : > { %p1181_p11 = pnand %p1179_p10, %p1176_p8 }
  0x73   : > { %1184 = shalt.err (!%p1181_p11)
}
  0x74   : > { %s1185_s19 = scalar_lea.vmem %s267_s13, 16  ;;  %s1192_s20 = scalar_lea.vmem %s267_s13, 32 }
  0x75   : > { %p1186_p12 = scmp.ne.s32.totalorder %s267_s13, %s1185_s19  ;;  %p1193_p1 = scmp.lt.s32.totalorder %s267_s13, %s267_s13 }
  0x76   : > { %p1194_p2 = scmp.lt.s32.totalorder %s1192_s20, %s1185_s19 }
  0x77   : > { %p1188_p13 = pnand %p1186_p12, %p1397_p9 }
  0x78   : > { %p1195_p5 = por %p1194_p2, %p1193_p1 }
  0x79   : > { %p1189_p0 = pneg %p1188_p13 }
  0x7b   : > { %p1196_p3 = pnand %p1195_p5, %p1189_p0 }
  0x7d   : > { %1199 = shalt.err (!%p1196_p3)
}
  0x7e   : > { %990 = dma.hbm_to_vmem [thread:$0]  (!%p1385_p7), %s1577_s5, 16, %s267_s13, [#allocation17]  }
  0x7f   : > { %p1005_p4 = scmp.eq.s32.totalorder %s1296_s23, 0  ;;  %s1305_s11 = smov [#allocation7]  }
  0x80   : > { %s290_s8 = sshll.u32 %s1305_s11, 4  ;;  %p1586_p9 = scmp.lt.s32.totalorder %s1296_s23, 2  ;;  %s291_s8 = int_to_ptr.vmem [resolvable:$true] %s290_s8 }
  0x81   : > { %s1200_s7 = scalar_lea.hbm %s1572_s0, 128 }
  0x82   : > { %p1495_p6 = pnand %p1005_p4, %p1586_p9  ;;  %p1201_p3 = scmp.ne.s32.totalorder %s1572_s0, %s1200_s7 }
  0x83   : > { %p1207_p11 = scmp.lt.u32.totalorder %s1200_s7, %s1572_s0 }
  0x84   : > { %p1202_p7 = pneg %p1495_p6 }
  0x86   : > { %p1203_p8 = pnand %p1202_p7, %p1201_p3 }
  0x88   : > { %p1204_p10 = pneg %p1203_p8 }
  0x8a   : > { %p1209_p12 = pnand %p1207_p11, %p1204_p10 }
  0x8c   : > { %1212 = shalt.err (!%p1209_p12)
}
  0x8d   : > { %s1213_s18 = scalar_lea.vmem %s291_s8, 128  ;;  %s1220_s30 = scalar_lea.vmem %s291_s8, 256 }
  0x8e   : > { %p1214_p13 = scmp.ne.s32.totalorder %s291_s8, %s1213_s18  ;;  %p1221_p2 = scmp.lt.s32.totalorder %s291_s8, %s291_s8 }
  0x8f   : > { %p1222_p5 = scmp.lt.s32.totalorder %s1220_s30, %s1213_s18 }
  0x90   : > { %p1216_p0 = pnand %p1214_p13, %p1202_p7 }
  0x91   : > { %p1223_p4 = por %p1222_p5, %p1221_p2 }
  0x92   : > { %p1217_p1 = pneg %p1216_p0 }
  0x94   : > { %p1224_p9 = pnand %p1223_p4, %p1217_p1 }
  0x96   : > { %1227 = shalt.err (!%p1224_p9)
}
  0x97   : > { %994 = dma.hbm_to_vmem [thread:$0]  (!%p1495_p6), %s1572_s0, 128, %s291_s8, [#allocation8]  }
  0x98   : > { %p1588_p3 = scmp.ne.s32.totalorder %s1583_s28, 0 }
  0x99   : > { %p1589_p8 = scmp.ne.s32.totalorder (!%p1588_p3), %s1582_s27, 0 }
  0x9a   : > { %299 = sbr.rel (%p1588_p3) target bundleno = 1028 (0x404), region = 44 }
  0xa1   : > { %1267 = dma.done.wait (%p1589_p8), [#allocation8], 128  }
  0xa2   : > { %1269 = vsyncadd (%p1589_p8), [#allocation8], 4294967168 }
  0xa3   : > { %1271 = dma.done.wait (%p1589_p8), [#allocation11], 2064  }
  0xa4   : > { %1273 = vsyncadd (%p1589_p8), [#allocation11], 4294965232 }
  0xa5   : > { %1275 = dma.done.wait (%p1589_p8), [#allocation14], 2064  }
  0xa6   : > { %1277 = vsyncadd (%p1589_p8), [#allocation14], 4294965232 }
  0xa7   : > { %1279 = dma.done.wait (%p1589_p8), [#allocation17], 16  }
  0xa8   : > { %1281 = vsyncadd (%p1589_p8), [#allocation17], 4294967280  ;;  %p786_p6 = scmp.ne.s32.totalorder %s1288_s21, 0 }
  0xa9   : > { %v362_v0 = vld [vmem:[#allocation10] sm:$0xff] (!%p786_p6)  ;;  %v363_v1 = vld [vmem:[#allocation10 + $0x8] sm:$0xff] (!%p786_p6)  ;;  %v364_v2 = vld [vmem:[#allocation10 + $0x10] sm:$0xff] (!%p786_p6)  ;;  %v1306_v3 = vmov (!%p786_p6), 0.0|0.0   ;;  %vm1307_vm0 = vmmov (!%p786_p6), 0   ;;  %v1308_v6 = vmov (!%p786_p6), 0.0  }
  0xaa   : > { %360 = sbr.rel (%p786_p6) target bundleno = 432 (0x1b0), region = 72  ;;  %899 = vmatprep.subr.bf16.mxu0 (!%p786_p6), %v1306_v3  ;;  %v900_v4 = vpack.c.bf16 (!%p786_p6), %v363_v1, %v362_v0  ;;  %v365_v5 = vld [vmem:[#allocation10 + $0x18] sm:$0xff] (!%p786_p6)  ;;  %861 = vmatprep.mubr.msk.f32.mxu0 (!%p786_p6), %vm1307_vm0, %v1308_v6  ;;  %452 = vst [vmem:[#allocation3] sm:$0x1] (!%p786_p6), %v1308_v6  ;;  %453 = vst [vmem:[#allocation4] sm:$0x1] (!%p786_p6), %v1308_v6 }
  0xab   : > { %v903_v7 = vpack.c.bf16 (!%p786_p6), %v365_v5, %v364_v2  ;;  %v366_v8 = vld [vmem:[#allocation10 + $0x20] sm:$0xff] (!%p786_p6)  ;;  %v367_v9 = vld [vmem:[#allocation10 + $0x28] sm:$0xff] (!%p786_p6)  ;;  %v368_v11 = vld [vmem:[#allocation10 + $0x30] sm:$0xff] (!%p786_p6) }
  0xac   : > { %901 = vmatpush3.bf16.msra.mxu0 (!%p786_p6), %v900_v4  ;;  %v906_v10 = vpack.c.bf16 (!%p786_p6), %v367_v9, %v366_v8  ;;  %v369_v12 = vld [vmem:[#allocation10 + $0x38] sm:$0xff] (!%p786_p6)  ;;  %v370_v14 = vld [vmem:[#allocation10 + $0x40] sm:$0xff] (!%p786_p6)  ;;  %v371_v15 = vld [vmem:[#allocation10 + $0x48] sm:$0xff] (!%p786_p6) }
  0xad   : > { %902 = vmatprep.subr.bf16.mxu0 (!%p786_p6), %v1306_v3  ;;  %v909_v13 = vpack.c.bf16 (!%p786_p6), %v369_v12, %v368_v11  ;;  %v912_v16 = vpack.c.bf16 (!%p786_p6), %v371_v15, %v370_v14  ;;  %v372_v17 = vld [vmem:[#allocation10 + $0x50] sm:$0xff] (!%p786_p6)  ;;  %v373_v18 = vld [vmem:[#allocation10 + $0x58] sm:$0xff] (!%p786_p6)  ;;  %v374_v20 = vld [vmem:[#allocation10 + $0x60] sm:$0xff] (!%p786_p6) }
  0xae   : > { %v915_v19 = vpack.c.bf16 (!%p786_p6), %v373_v18, %v372_v17  ;;  %v375_v21 = vld [vmem:[#allocation10 + $0x68] sm:$0xff] (!%p786_p6)  ;;  %v376_v23 = vld [vmem:[#allocation10 + $0x70] sm:$0xff] (!%p786_p6)  ;;  %v377_v24 = vld [vmem:[#allocation10 + $0x78] sm:$0xff] (!%p786_p6) }
  0xaf   : > { %v918_v22 = vpack.c.bf16 (!%p786_p6), %v375_v21, %v374_v20  ;;  %v921_v25 = vpack.c.bf16 (!%p786_p6), %v377_v24, %v376_v23  ;;  %v361_v26 = vld [vmem:[#allocation7] sm:$0xff] (!%p786_p6) }
  0xb0   : > { %904 = vmatpush3.bf16.msra.mxu0 (!%p786_p6), %v903_v7 }
  0xb1   : > { %905 = vmatprep.subr.bf16.mxu0 %v1306_v3  ;;  %v454_v39 = vld [vmem:[#allocation3] sm:$0x1]  ;;  %v463_v42 = vld [vmem:[#allocation4] sm:$0x1] }
  0xb4   : > { %907 = vmatpush3.bf16.msra.mxu0 %v906_v10 }
  0xb5   : > { %908 = vmatprep.subr.bf16.mxu0 %v1306_v3 }
  0xb8   : > { %910 = vmatpush3.bf16.msra.mxu0 %v909_v13 }
  0xb9   : > { %911 = vmatprep.subr.bf16.mxu0 %v1306_v3 }
  0xbc   : > { %913 = vmatpush3.bf16.msra.mxu0 %v912_v16 }
  0xbd   : > { %914 = vmatprep.subr.bf16.mxu0 %v1306_v3 }
  0xc0   : > { %916 = vmatpush3.bf16.msra.mxu0 %v915_v19 }
  0xc1   : > { %917 = vmatprep.subr.bf16.mxu0 %v1306_v3 }
  0xc4   : > { %919 = vmatpush3.bf16.msra.mxu0 %v918_v22 }
  0xc5   : > { %920 = vmatprep.subr.bf16.mxu0 %v1306_v3 }
  0xc8   : > { %922 = vmatpush3.bf16.msra.mxu0 %v921_v25 }
  0xcb   : > { %862 = vmatmul.mubr.f32.vlgmr.msra.gmra.mrb[0].mxu0 %v361_v26 }
 0x19e   : > { %v444_v27 = vpop.f32.mrb[0].mxu0 }
 0x19f   : > { %v455_v28 = vrot.slane %v444_v27, 4  ;;  %v464_v29 = vmul.f32 %v444_v27, %v444_v27  ;;  %475 = vst [vmem:[#allocation2] sm:$0xff] %v444_v27  ;;  %v863_v30 = vpop.f32.mrb[1].mxu0 }
 0x1a1   : > { %v456_v31 = vadd.f32 %v455_v28, %v444_v27  ;;  %v465_v32 = vrot.slane %v464_v29, 4 }
 0x1a3   : > { %v457_v33 = vrot.slane %v456_v31, 2  ;;  %v466_v34 = vadd.f32 %v465_v32, %v464_v29 }
 0x1a5   : > { %v458_v35 = vadd.f32 %v457_v33, %v456_v31  ;;  %v467_v36 = vrot.slane %v466_v34, 2 }
 0x1a7   : > { %v459_v37 = vrot.slane %v458_v35, 1  ;;  %v468_v38 = vadd.f32 %v467_v36, %v466_v34 }
 0x1a9   : > { %v460_v40 = vadd.f32 %v459_v37, %v458_v35  ;;  %v469_v41 = vrot.slane %v468_v38, 1 }
 0x1ab   : > { %v461_v43 = vadd.f32 %v460_v40, %v454_v39  ;;  %v470_v44 = vadd.f32 %v469_v41, %v468_v38 }
 0x1ad   : > { %462 = vst [vmem:[#allocation3] sm:$0x1] %v461_v43  ;;  %v471_v45 = vadd.f32 %v470_v44, %v463_v42 }
 0x1af   : > { %472 = vst [vmem:[#allocation4] sm:$0x1] %v471_v45 }
 0x1b0 PF: > { %p787_p7 = scmp.ne.s32.totalorder %s1288_s21, 1 }
 0x1b1   : > { %v520_v46 = vld [vmem:[#allocation15] sm:$0xff] (!%p787_p7)  ;;  %v521_v47 = vld [vmem:[#allocation15 + $0x8] sm:$0xff] (!%p787_p7)  ;;  %v522_v48 = vld [vmem:[#allocation15 + $0x10] sm:$0xff] (!%p787_p7)  ;;  %v1309_v49 = vmov (!%p787_p7), 0.0|0.0   ;;  %vm1310_vm1 = vmmov (!%p787_p7), 0   ;;  %v1311_v52 = vmov (!%p787_p7), 0.0  }
 0x1b2   : > { %479 = sbr.rel (%p787_p7) target bundleno = 1005 (0x3ed), region = 80  ;;  %923 = vmatprep.subr.bf16.mxu0 (!%p787_p7), %v1309_v49  ;;  %v924_v50 = vpack.c.bf16 (!%p787_p7), %v521_v47, %v520_v46  ;;  %v523_v51 = vld [vmem:[#allocation15 + $0x18] sm:$0xff] (!%p787_p7)  ;;  %896 = vmatprep.mubr.msk.f32.mxu0 (!%p787_p7), %vm1310_vm1, %v1311_v52  ;;  %v524_v54 = vld [vmem:[#allocation15 + $0x20] sm:$0xff] (!%p787_p7)  ;;  %v525_v55 = vld [vmem:[#allocation15 + $0x28] sm:$0xff] (!%p787_p7) }
 0x1b3   : > { %v927_v53 = vpack.c.bf16 (!%p787_p7), %v523_v51, %v522_v48  ;;  %v930_v60 = vpack.c.bf16 (!%p787_p7), %v525_v55, %v524_v54  ;;  %v526_v61 = vld [vmem:[#allocation15 + $0x30] sm:$0xff] (!%p787_p7)  ;;  %v527_v62 = vld [vmem:[#allocation15 + $0x38] sm:$0xff] (!%p787_p7)  ;;  %v528_v2 = vld [vmem:[#allocation15 + $0x40] sm:$0xff] (!%p787_p7) }
 0x1b4   : > { %925 = vmatpush3.bf16.msra.mxu0 (!%p787_p7), %v924_v50  ;;  %v484_v56 = vld [vmem:[#allocation3] sm:$0x1] (!%p787_p7)  ;;  %v933_v1 = vpack.c.bf16 (!%p787_p7), %v527_v62, %v526_v61  ;;  %v530_v7 = vld [vmem:[#allocation15 + $0x50] sm:$0xff] (!%p787_p7)  ;;  %v531_v8 = vld [vmem:[#allocation15 + $0x58] sm:$0xff] (!%p787_p7) }
 0x1b5   : > { %926 = vmatprep.subr.bf16.mxu0 (!%p787_p7), %v1309_v49  ;;  %v485_v58 = vmul.f32 (!%p787_p7), 0.125, %v484_v56  ;;  %v529_v3 = vld [vmem:[#allocation15 + $0x48] sm:$0xff] (!%p787_p7)  ;;  %v939_v9 = vpack.c.bf16 (!%p787_p7), %v531_v8, %v530_v7  ;;  %v532_v10 = vld [vmem:[#allocation15 + $0x60] sm:$0xff] (!%p787_p7)  ;;  %v534_v13 = vld [vmem:[#allocation15 + $0x70] sm:$0xff] (!%p787_p7) }
 0x1b6   : > { %v486_v57 = vld [vmem:[#allocation4] sm:$0x1] (!%p787_p7)  ;;  %v936_v6 = vpack.c.bf16 (!%p787_p7), %v529_v3, %v528_v2  ;;  %v535_v14 = vld [vmem:[#allocation15 + $0x78] sm:$0xff] (!%p787_p7)  ;;  %v502_v22 = vld [vmem:[#allocation2] sm:$0xff] (!%p787_p7) }
 0x1b7   : > { %v487_v59 = vmul.f32 (!%p787_p7), 0.125, %v486_v57  ;;  %v488_v63 = vmul.f32 (!%p787_p7), %v485_v58, %v485_v58  ;;  %v533_v11 = vld [vmem:[#allocation15 + $0x68] sm:$0xff] (!%p787_p7)  ;;  %v491_v15 = vld [vmem:[#allocation12] sm:$0x1] (!%p787_p7)  ;;  %v945_v17 = vpack.c.bf16 (!%p787_p7), %v535_v14, %v534_v13  ;;  %v496_v19 = vld [vmem:[#allocation13] sm:$0x1] (!%p787_p7) }
 0x1b8   : > { %928 = vmatpush3.bf16.msra.mxu0 (!%p787_p7), %v927_v53  ;;  %v942_v12 = vpack.c.bf16 (!%p787_p7), %v533_v11, %v532_v10  ;;  %v790_v28 = vld [vmem:[#allocation16] ss:$0 sm:$0xff] (!%p787_p7) }
 0x1b9   : > { %929 = vmatprep.subr.bf16.mxu0 %v1309_v49  ;;  %v489_v0 = vsub.f32 %v487_v59, %v488_v63 }
 0x1bb   : > { %v490_v4 = vmax.f32 %v489_v0, 0.0 }
 0x1bc   : > { %931 = vmatpush3.bf16.msra.mxu0 %v930_v60 }
 0x1bd   : > { %932 = vmatprep.subr.bf16.mxu0 %v1309_v49  ;;  %v492_v5 = vadd.f32 1e-05, %v490_v4 }
 0x1bf   : > { %1054 = vrsqrt.f32 %v492_v5 }
 0x1c0   : > { %934 = vmatpush3.bf16.msra.mxu0 %v933_v1 }
 0x1c1   : > { %935 = vmatprep.subr.bf16.mxu0 %v1309_v49 }
 0x1c4   : > { %937 = vmatpush3.bf16.msra.mxu0 %v936_v6 }
 0x1c5   : > { %938 = vmatprep.subr.bf16.mxu0 %v1309_v49 }
 0x1c8   : > { %940 = vmatpush3.bf16.msra.mxu0 %v939_v9 }
 0x1c9   : > { %941 = vmatprep.subr.bf16.mxu0 %v1309_v49  ;;  %v1055_v16 = vpop.eup %1054 }
 0x1ca   : > { %v494_v18 = vmul.f32 %v1055_v16, %v491_v15 }
 0x1cc   : > { %943 = vmatpush3.bf16.msra.mxu0 %v942_v12  ;;  %495 = vst [vmem:[#allocation5] sm:$0x1] %v494_v18  ;;  %v497_v20 = vmul.f32 %v494_v18, %v485_v58 }
 0x1cd   : > { %944 = vmatprep.subr.bf16.mxu0 %v1309_v49 }
 0x1ce   : > { %v498_v21 = vsub.f32 %v496_v19, %v497_v20 }
 0x1d0   : > { %946 = vmatpush3.bf16.msra.mxu0 %v945_v17  ;;  %499 = vst [vmem:[#allocation6] sm:$0x1] %v498_v21 }
 0x1d3   : > { %v788_v23 = vld [vmem:[#allocation5] ss:$0 sm:$0xff] }
 0x1d4   : > { %v510_v24 = vmul.f32 %v788_v23, %v502_v22 }
 0x1d7   : > { %v789_v25 = vld [vmem:[#allocation6] ss:$0 sm:$0xff] }
 0x1d8   : > { %v518_v26 = vadd.f32 %v789_v25, %v510_v24 }
 0x1da   : > { %v519_v27 = vmax.f32 %v518_v26, 0.0 }
 0x1dc   : > { %897 = vmatmul.mubr.f32.vlgmr.msra.gmra.mrb[0].mxu0 %v519_v27 }
 0x2af   : > { %v609_v29 = vpop.f32.mrb[0].mxu0 }
 0x2b0   : > { %v610_v30 = vadd.f32 %v790_v28, %v609_v29  ;;  %v898_v31 = vpop.f32.mrb[1].mxu0 }
 0x2b2   : > { %613 = vmax.xlane.f32.xlu0 %v610_v30 }
 0x33f   : > { %v614_v32 = vpop.xlane.xlu0 %613 }
 0x340   : > { %v615_v33 = vsub.f32 %v610_v30, %v614_v32 }
 0x342   : > { %v616_v34 = vmul.f32 1.442695, %v615_v33 }
 0x344   : > { %1056 = vpow2.f32 %v616_v34 }
 0x34e   : > { %v1057_v35 = vpop.eup %1056 }
 0x34f   : > { %618 = vadd.xlane.f32.xlu0 %v1057_v35 }
 0x3dc   : > { %v619_v36 = vpop.xlane.xlu0 %618 }
 0x3dd   : > { %1058 = vlog2.f32 %v619_v36 }
 0x3e7   : > { %v1059_v37 = vpop.eup %1058 }
 0x3e8   : > { %v621_v38 = vmul.f32 0.6931472, %v1059_v37 }
 0x3ea   : > { %v622_v39 = vsub.f32 %v615_v33, %v621_v38 }
 0x3ec   : > { %623 = vst [vmem:[#allocation18] sm:$0xff] %v622_v39 }
 0x3ed PF: > { %p1537_p10 = scmp.eq.s32.totalorder %s769_s24, 1  ;;  %s1312_s27 = smov [#allocation18]  }
 0x3ee   : > { %s639_s28 = sshll.u32 %s1312_s27, 4  ;;  %s640_s28 = int_to_ptr.vmem [resolvable:$true] %s639_s28 }
 0x3ef   : > { %s1228_s20 = scalar_lea.vmem %s640_s28, 128  ;;  %s1234_s25 = scalar_lea.vmem %s640_s28, 256 }
 0x3f0   : > { %p1229_p11 = scmp.ne.s32.totalorder %s640_s28, %s1228_s20  ;;  %p1235_p0 = scmp.lt.s32.totalorder %s640_s28, %s640_s28 }
 0x3f1   : > { %p1236_p1 = scmp.lt.s32.totalorder %s1234_s25, %s1228_s20 }
 0x3f2   : > { %p1230_p12 = pnand %p1229_p11, %p1537_p10 }
 0x3f3   : > { %p1237_p2 = por %p1236_p1, %p1235_p0 }
 0x3f4   : > { %p1231_p13 = pneg %p1230_p12 }
 0x3f6   : > { %p1238_p5 = pnand %p1237_p2, %p1231_p13 }
 0x3f8   : > { %1241 = shalt.err (!%p1238_p5)
}
 0x3f9   : > { %s1242_s11 = scalar_lea.hbm %s1578_s6, 128 }
 0x3fa   : > { %p1243_p4 = scmp.ne.s32.totalorder %s1578_s6, %s1242_s11  ;;  %p1248_p8 = scmp.lt.u32.totalorder %s1242_s11, %s1578_s6 }
 0x3fc   : > { %p1244_p9 = pnand %p1243_p4, %p1537_p10 }
 0x3fe   : > { %p1245_p3 = pneg %p1244_p9 }
 0x400   : > { %p1250_p6 = pnand %p1248_p8, %p1245_p3 }
 0x402   : > { %1253 = shalt.err (!%p1250_p6)
}
 0x403   : > { %972 = dma.vmem_to_hbm [thread:$0]  (%p1537_p10), %s640_s28, 128, %s1578_s6, [#allocation9]  }
 0x404 PF: > { %s1591_s16 = sadd.s32 4294967294, %s1296_s23   ;;  %p1592_p11 = scmp.ge.s32.totalorder %s1296_s23, 2 }
 0x405   : > { %p1014_p7 = scmp.eq.s32.totalorder %s1591_s16, 1 }
 0x407   : > { %p996_p12 = pnand %p1014_p7, %p1592_p11 }
 0x409   : > { %1283 = dma.done.wait (!%p996_p12), [#allocation9], 128  }
 0x40a   : > { %1285 = vsyncadd (!%p996_p12), [#allocation9], 4294967168  ;;  %s25_s23 = sadd.s32 1, %s1296_s23   ;;  %s1593_s21 = smov %s1292_s22 }
 0x40b   : > { %p22_p13 = scmp.ge.s32.totalorder %s25_s23, 4   ;;  %s1594_s22 = smov %s1596_s26 }
 0x40d   :  { %24 = sbr.rel (!%p22_p13) target bundleno = 8 (0x8), region = 127 }
 0x414   :  { %657 = vsyncpa [#allocation8], 1 }
 0x415   :  { %659 = vsyncpa [#allocation8 + $0x1], 1 }
 0x416   :  { %660 = vsyncpa [#allocation11], 1 }
 0x417   :  { %661 = vsyncpa [#allocation14], 1 }
 0x418   :  { %662 = vsyncpa [#allocation17], 1 }
 0x419   :  { %663 = vsyncpa [#allocation9], 1 }
 0x41a   :  { %665 = vsyncpa [#allocation9 + $0x1], 1 }

</bundles_post_ra>
